<compile_context>
chip_gen: v7x
topology: tpu7x:2x2x1
jax: 0.10.0
libtpu: 0.0.40
codegen_flags: <defaults>
</compile_context>

<pallas_src>
import jax
import jax.numpy as jnp
from jax import lax
from jax.experimental import pallas as pl
from jax.experimental.pallas import tpu as pltpu


def _round_up(x, m):
    return (x + m - 1) // m * m


def _cdiv(a, b):
    return -(-a // b)


def _sigmoid(z):
    # sigmoid(z) = 0.5 * tanh(z/2) + 0.5 : a single EUP transcendental per
    # element (vs exp + reciprocal) and bounded for every z.
    return 0.5 * jnp.tanh(0.5 * z) + 0.5


def _mlp_kernel(x_ref, w1_ref, b1_ref, w2_ref, b2_ref, w3_ref, b3_ref, o_ref):
    # x arrives in its natural (TB, F) f32 layout; cast to bf16 here and let
    # the fc1 contraction over F place the batch into lanes — no wrapper
    # transpose, every intermediate is lane-dense.
    x_bf = x_ref[...].astype(jnp.bfloat16)                         # (TB, F)
    # fc1: (H1, F) x (TB, F) contracted over F -> (H1, TB); bf16 MXU, f32 acc.
    h1 = lax.dot_general(w1_ref[...], x_bf,
                         dimension_numbers=(((1,), (1,)), ((), ())),
                         preferred_element_type=jnp.float32)
    h1 = _sigmoid(h1 + b1_ref[...])                                # (H1, TB) f32
    # fc2: (H2, H1) @ (H1, TB) -> (H2, TB)
    h2 = jnp.dot(w2_ref[...], h1.astype(jnp.bfloat16),
                 preferred_element_type=jnp.float32)
    h2 = _sigmoid(h2 + b2_ref[...])                                # (H2, TB) f32
    # output layer 128 -> 1: VPU broadcast-multiply + XLU sublane reduction
    # (frees the MXU from a wasteful width-1 matmul); lane-dense (1, TB) row.
    out = jnp.sum(h2 * w3_ref[...], axis=0, keepdims=True)
    o_ref[...] = out + b3_ref[...]


def _choose_tiling(B, F, H1, H2, batch_tile):
    """Pick (tile_rows, grid_steps, padded_batch).

    Rules: tile is a multiple of 128 lanes, capped by the user's batch_tile and
    a ~20 MiB VMEM working-set budget; padding is derived from 128-row blocks
    (not the tile size); the grid is kept even (>= 2 when possible) so the
    "parallel" batch axis splits across v7x's two TensorCores.
    """
    b128 = _round_up(B, 128)
    n_blocks = b128 // 128
    # Per-lane VMEM bytes: double-buffered f32 x tile + in-kernel bf16 copy +
    # f32/bf16 intermediates.  ~20 MiB budget keeps us comfortably inside the
    # 32 MiB scoped limit requested below on every chip (v7x physical = 64 MiB).
    per_row_bytes = F * (2 * 4 + 2) + H1 * (4 + 2) + H2 * 4 + 16
    vmem_rows = max(128, ((20 << 20) // per_row_bytes) // 128 * 128)
    cap_blocks = max(1, min(int(batch_tile), vmem_rows) // 128)

    steps = _cdiv(n_blocks, cap_blocks)
    if n_blocks >= 2:
        steps = max(steps, 2)            # give v7x's second TensorCore work
        steps += steps % 2               # balanced (even) 2-TC split
    blocks_per_tile = _cdiv(n_blocks, steps)
    tb = blocks_per_tile * 128
    grid_steps = _cdiv(n_blocks, blocks_per_tile)
    if grid_steps > 1 and grid_steps % 2:
        grid_steps += 1                  # keep the grid even for v7x
    return tb, grid_steps, grid_steps * tb


def multiple_regression_forward(x, params, *, batch_tile=8192):
    """x: (B, F) float32.  params in PyTorch layout:
       w1 (64, F), b1 (64,), w2 (128, 64), b2 (128,), w3 (1, 128), b3 (1,).
       Returns (B, 1) float32."""
    w1, b1, w2, b2, w3, b3 = params
    B, F = x.shape
    H1 = w1.shape[0]
    H2 = w2.shape[0]

    tb, grid_steps, b_pad = _choose_tiling(B, F, H1, H2, batch_tile)

    x_in = x.astype(jnp.float32)
    if b_pad != B:
        # Plain same-layout zero pad only when needed — no transpose / dtype
        # conversion pass over x in the wrapper.
        x_in = jnp.pad(x_in, ((0, b_pad - B), (0, 0)))

    w1_bf = w1.astype(jnp.bfloat16)                  # (H1, F)
    w2_bf = w2.astype(jnp.bfloat16)                  # (H2, H1)
    b1_c = b1.reshape(H1, 1).astype(jnp.float32)
    b2_c = b2.reshape(H2, 1).astype(jnp.float32)
    w3_c = w3.reshape(H2, 1).astype(jnp.float32)     # f32 column for the VPU head
    b3_c = b3.reshape(1, 1).astype(jnp.float32)

    flops = 2 * b_pad * (F * H1 + H1 * H2 + H2)
    transcendentals = b_pad * (H1 + H2)              # one tanh per activation
    bytes_accessed = (b_pad * F * 4                  # x (f32), read once by kernel
                      + (H1 * F + H2 * H1) * 2       # weights (bf16)
                      + (H1 + H2 + H2 + 1) * 4       # biases + w3 column (f32)
                      + b_pad * 4)                   # output (f32)

    outT = pl.pallas_call(
        _mlp_kernel,
        out_shape=jax.ShapeDtypeStruct((1, b_pad), jnp.float32),
        grid=(grid_steps,),
        in_specs=[
            pl.BlockSpec((tb, F), lambda i: (i, 0)),   # x tile: DMA'd & double-buffered per step
            pl.BlockSpec((H1, F), lambda i: (0, 0)),   # weights/biases: VMEM-resident across steps
            pl.BlockSpec((H1, 1), lambda i: (0, 0)),
            pl.BlockSpec((H2, H1), lambda i: (0, 0)),
            pl.BlockSpec((H2, 1), lambda i: (0, 0)),
            pl.BlockSpec((H2, 1), lambda i: (0, 0)),
            pl.BlockSpec((1, 1), lambda i: (0, 0)),
        ],
        out_specs=pl.BlockSpec((1, tb), lambda i: (0, i)),
        compiler_params=pltpu.CompilerParams(
            dimension_semantics=("parallel",),         # shard batch steps over v7x's 2 TCs
            vmem_limit_bytes=32 << 20,                 # lift v5e's 16 MiB default scoped limit
        ),
        cost_estimate=pl.CostEstimate(
            flops=flops,
            transcendentals=transcendentals,
            bytes_accessed=bytes_accessed,
        ),
    )(x_in, w1_bf, b1_c, w2_bf, b2_c, w3_c, b3_c)

    # Lane-dense (1, b_pad) row back to the module's (B, 1); tiny slice/reshape.
    return outT[0, :B].reshape(B, 1)


def init_params(key, num_features):
    """torch.nn.Linear-style init: U(-1/sqrt(fan_in), +1/sqrt(fan_in)), PyTorch layout."""
    def linear(k, fan_in, fan_out):
        kw, kb = jax.random.split(k)
        bound = 1.0 / jnp.sqrt(jnp.float32(fan_in))
        w = jax.random.uniform(kw, (fan_out, fan_in), jnp.float32, -bound, bound)
        b = jax.random.uniform(kb, (fan_out,), jnp.float32, -bound, bound)
        return w, b

    k1, k2, k3 = jax.random.split(key, 3)
    w1, b1 = linear(k1, num_features, 64)
    w2, b2 = linear(k2, 64, 128)
    w3, b3 = linear(k3, 128, 1)
    return w1, b1, w2, b2, w3, b3


def _reference_forward(x, params):
    w1, b1, w2, b2, w3, b3 = params
    h = jax.nn.sigmoid(x @ w1.T + b1)
    h = jax.nn.sigmoid(h @ w2.T + b2)
    return h @ w3.T + b3


if __name__ == "__main__":
    num_features = 32
    key = jax.random.PRNGKey(0)
    k_params, k_x1, k_x2 = jax.random.split(key, 3)
    params = init_params(k_params, num_features)

    # Small case, matching the module at toy size (single 128-lane tile).
    x_small = jax.random.normal(k_x1, (8, num_features), jnp.float32)
    out_small = jax.block_until_ready(multiple_regression_forward(x_small, params))
    ref_small = _reference_forward(x_small, params)
    assert out_small.shape == (8, 1)
    assert jnp.allclose(out_small, ref_small, atol=2e-2, rtol=2e-2)

    # Larger, non-tile-aligned batch: exercises the even multi-step grid,
    # batch padding and weight residency across steps.
    x_big = jax.random.normal(k_x2, (1000, num_features), jnp.float32)
    out_big = jax.block_until_ready(multiple_regression_forward(x_big, params))
    ref_big = _reference_forward(x_big, params)
    assert out_big.shape == (1000, 1)
    assert jnp.allclose(out_big, ref_big, atol=2e-2, rtol=2e-2)

    print("KERNEL_OK")
</pallas_src>

<mosaic_0001>
module attributes {stable_mosaic.version = 11 : i64} {
  func.func @_mlp_kernel(%arg0: i32, %arg1: memref<128x32xf32, #tpu.memory_space<vmem>>, %arg2: memref<64x32xbf16, #tpu.memory_space<vmem>>, %arg3: memref<64x1xf32, #tpu.memory_space<vmem>>, %arg4: memref<128x64xbf16, #tpu.memory_space<vmem>>, %arg5: memref<128x1xf32, #tpu.memory_space<vmem>>, %arg6: memref<128x1xf32, #tpu.memory_space<vmem>>, %arg7: memref<1x1xf32, #tpu.memory_space<vmem>>, %arg8: memref<1x128xf32, #tpu.memory_space<vmem>>) attributes {dimension_semantics = [#tpu.dimension_semantics<parallel>], iteration_bounds = array<i64: 1>, scalar_prefetch = 0 : i64, scratch_operands = 0 : i64, tpu.core_type = #tpu.core_type<tc>, window_params = [{transform_indices = @transform_0, window_bounds = array<i64: 128, 32>}, {pipeline_mode = #tpu.pipeline_mode<synchronous>, transform_indices = @transform_1, window_bounds = array<i64: 64, 32>}, {pipeline_mode = #tpu.pipeline_mode<synchronous>, transform_indices = @transform_2, window_bounds = array<i64: 64, 1>}, {pipeline_mode = #tpu.pipeline_mode<synchronous>, transform_indices = @transform_3, window_bounds = array<i64: 128, 64>}, {pipeline_mode = #tpu.pipeline_mode<synchronous>, transform_indices = @transform_4, window_bounds = array<i64: 128, 1>}, {pipeline_mode = #tpu.pipeline_mode<synchronous>, transform_indices = @transform_5, window_bounds = array<i64: 128, 1>}, {pipeline_mode = #tpu.pipeline_mode<synchronous>, transform_indices = @transform_6, window_bounds = array<i64: 1, 1>}, {transform_indices = @transform_7, window_bounds = array<i64: 1, 128>}]} {
    %c0 = arith.constant 0 : index
    %c0_0 = arith.constant 0 : index
    %0 = vector.load %arg1[%c0, %c0_0] : memref<128x32xf32, #tpu.memory_space<vmem>>, vector<128x32xf32>
    %1 = arith.truncf %0 : vector<128x32xf32> to vector<128x32xbf16>
    %c0_1 = arith.constant 0 : index
    %c0_2 = arith.constant 0 : index
    %2 = vector.load %arg2[%c0_1, %c0_2] : memref<64x32xbf16, #tpu.memory_space<vmem>>, vector<64x32xbf16>
    %cst = arith.constant dense<0.000000e+00> : vector<64x128xf32>
    %3 = tpu.matmul %2, %1, %cst {dimension_numbers = #tpu.dot_dimension_numbers<[1], [1], [0], [0], [0, 0, 1, 0], [], []>} : vector<64x32xbf16>, vector<128x32xbf16>, vector<64x128xf32> -> vector<64x128xf32>
    %c0_3 = arith.constant 0 : index
    %c0_4 = arith.constant 0 : index
    %4 = vector.load %arg3[%c0_3, %c0_4] : memref<64x1xf32, #tpu.memory_space<vmem>>, vector<64x1xf32>
    %5 = vector.broadcast %4 : vector<64x1xf32> to vector<64x128xf32>
    %6 = arith.addf %3, %5 : vector<64x128xf32>
    %cst_5 = arith.constant 5.000000e-01 : f32
    %7 = vector.broadcast %cst_5 : f32 to vector<64x128xf32>
    %8 = arith.mulf %7, %6 : vector<64x128xf32>
    %9 = math.tanh %8 : vector<64x128xf32>
    %cst_6 = arith.constant 5.000000e-01 : f32
    %10 = vector.broadcast %cst_6 : f32 to vector<64x128xf32>
    %11 = arith.mulf %10, %9 : vector<64x128xf32>
    %cst_7 = arith.constant 5.000000e-01 : f32
    %12 = vector.broadcast %cst_7 : f32 to vector<64x128xf32>
    %13 = arith.addf %11, %12 : vector<64x128xf32>
    %c0_8 = arith.constant 0 : index
    %c0_9 = arith.constant 0 : index
    %14 = vector.load %arg4[%c0_8, %c0_9] : memref<128x64xbf16, #tpu.memory_space<vmem>>, vector<128x64xbf16>
    %15 = arith.truncf %13 : vector<64x128xf32> to vector<64x128xbf16>
    %cst_10 = arith.constant dense<0.000000e+00> : vector<128x128xf32>
    %16 = tpu.matmul %14, %15, %cst_10 {dimension_numbers = #tpu.dot_dimension_numbers<[1], [0], [0], [1], [0, 0, 1, 1], [], []>} : vector<128x64xbf16>, vector<64x128xbf16>, vector<128x128xf32> -> vector<128x128xf32>
    %c0_11 = arith.constant 0 : index
    %c0_12 = arith.constant 0 : index
    %17 = vector.load %arg5[%c0_11, %c0_12] : memref<128x1xf32, #tpu.memory_space<vmem>>, vector<128x1xf32>
    %18 = vector.broadcast %17 : vector<128x1xf32> to vector<128x128xf32>
    %19 = arith.addf %16, %18 : vector<128x128xf32>
    %cst_13 = arith.constant 5.000000e-01 : f32
    %20 = vector.broadcast %cst_13 : f32 to vector<128x128xf32>
    %21 = arith.mulf %20, %19 : vector<128x128xf32>
    %22 = math.tanh %21 : vector<128x128xf32>
    %cst_14 = arith.constant 5.000000e-01 : f32
    %23 = vector.broadcast %cst_14 : f32 to vector<128x128xf32>
    %24 = arith.mulf %23, %22 : vector<128x128xf32>
    %cst_15 = arith.constant 5.000000e-01 : f32
    %25 = vector.broadcast %cst_15 : f32 to vector<128x128xf32>
    %26 = arith.addf %24, %25 : vector<128x128xf32>
    %c0_16 = arith.constant 0 : index
    %c0_17 = arith.constant 0 : index
    %27 = vector.load %arg6[%c0_16, %c0_17] : memref<128x1xf32, #tpu.memory_space<vmem>>, vector<128x1xf32>
    %28 = vector.broadcast %27 : vector<128x1xf32> to vector<128x128xf32>
    %29 = arith.mulf %26, %28 : vector<128x128xf32>
    %cst_18 = arith.constant dense<0.000000e+00> : vector<128xf32>
    %30 = vector.multi_reduction <add>, %29, %cst_18 [0] : vector<128x128xf32> to vector<128xf32>
    %31 = vector.shape_cast %30 : vector<128xf32> to vector<1x128xf32>
    %c0_19 = arith.constant 0 : index
    %c0_20 = arith.constant 0 : index
    %32 = vector.load %arg7[%c0_19, %c0_20] : memref<1x1xf32, #tpu.memory_space<vmem>>, vector<1x1xf32>
    %33 = vector.broadcast %32 : vector<1x1xf32> to vector<1x128xf32>
    %34 = arith.addf %31, %33 : vector<1x128xf32>
    %c0_21 = arith.constant 0 : index
    %c0_22 = arith.constant 0 : index
    %35 = vector.load %arg8[%c0_21, %c0_22] : memref<1x128xf32, #tpu.memory_space<vmem>>, vector<1x128xf32>
    tpu.vector_store %arg8[%c0_21, %c0_22], %34 {strides = array<i32>} : memref<1x128xf32, #tpu.memory_space<vmem>>, vector<1x128xf32>,
    return
  }
  func.func @transform_0(%arg0: i32) -> (i32, i32) {
    %c0_i32 = arith.constant 0 : i32
    %c0_i32_0 = arith.constant 0 : i32
    return %arg0, %c0_i32 : i32, i32
  }
  func.func @transform_1(%arg0: i32) -> (i32, i32) {
    %c0_i32 = arith.constant 0 : i32
    %c0_i32_0 = arith.constant 0 : i32
    %c0_i32_1 = arith.constant 0 : i32
    return %c0_i32, %c0_i32_0 : i32, i32
  }
  func.func @transform_2(%arg0: i32) -> (i32, i32) {
    %c0_i32 = arith.constant 0 : i32
    %c0_i32_0 = arith.constant 0 : i32
    %c0_i32_1 = arith.constant 0 : i32
    return %c0_i32, %c0_i32_0 : i32, i32
  }
  func.func @transform_3(%arg0: i32) -> (i32, i32) {
    %c0_i32 = arith.constant 0 : i32
    %c0_i32_0 = arith.constant 0 : i32
    %c0_i32_1 = arith.constant 0 : i32
    return %c0_i32, %c0_i32_0 : i32, i32
  }
  func.func @transform_4(%arg0: i32) -> (i32, i32) {
    %c0_i32 = arith.constant 0 : i32
    %c0_i32_0 = arith.constant 0 : i32
    %c0_i32_1 = arith.constant 0 : i32
    return %c0_i32, %c0_i32_0 : i32, i32
  }
  func.func @transform_5(%arg0: i32) -> (i32, i32) {
    %c0_i32 = arith.constant 0 : i32
    %c0_i32_0 = arith.constant 0 : i32
    %c0_i32_1 = arith.constant 0 : i32
    return %c0_i32, %c0_i32_0 : i32, i32
  }
  func.func @transform_6(%arg0: i32) -> (i32, i32) {
    %c0_i32 = arith.constant 0 : i32
    %c0_i32_0 = arith.constant 0 : i32
    %c0_i32_1 = arith.constant 0 : i32
    return %c0_i32, %c0_i32_0 : i32, i32
  }
  func.func @transform_7(%arg0: i32) -> (i32, i32) {
    %c0_i32 = arith.constant 0 : i32
    %c0_i32_0 = arith.constant 0 : i32
    return %c0_i32, %arg0 : i32, i32
  }
}

</mosaic_0001>

<bundles_post_ra>
// kernel: tpu_custom_call.1
= control target key start
LH: loop header
LB: loop body
LE: loop exit
PB: predicated region body
PF: predicated region fallthrough
CT: control target
= control target key end

     0   :  { %s1267_s0 = inlined_call_operand.vmem [shape: f32[128,32], index: 0, kind: input, shape index: {}]   ;;  %s1268_s1 = inlined_call_operand.vmem [shape: bf16[64,32], index: 1, kind: input, shape index: {}]   ;;  %s1269_s2 = inlined_call_operand.vmem [shape: f32[64,1], index: 2, kind: input, shape index: {}]   ;;  %s1270_s3 = inlined_call_operand.vmem [shape: bf16[128,64], index: 3, kind: input, shape index: {}]   ;;  %s1271_s4 = inlined_call_operand.vmem [shape: f32[128,1], index: 4, kind: input, shape index: {}]   ;;  %s1272_s5 = inlined_call_operand.vmem [shape: f32[128,1], index: 5, kind: input, shape index: {}]   ;;  %s1273_s6 = inlined_call_operand.<no memory space> [shape: f32[1,1], index: 6, kind: input, shape index: {}]   ;;  %s1274_s7 = inlined_call_operand.hbm [shape: f32[1,128], index: 7, kind: output, shape index: {}]  }
   0x1   :  { %v12_v0 = vstv %s1273_s6 }
   0x2   :  { %13 = vst [vmem:[#allocation2] sm:$0x1] %v12_v0 }
   0x3   :  { %v30_v1 = vld [vmem:[%s1267_s0] sm:$0xff]  ;;  %v31_v2 = vld [vmem:[%s1267_s0 + $0x8] sm:$0xff]  ;;  %vm130_vm0 = vcmask 261120   ;;  %v32_v3 = vld [vmem:[%s1267_s0 + $0x10] sm:$0xff]  ;;  %v957_v6 = vmov 0  }
   0x4   :  { %v46_v4 = vpack.c.bf16 %v31_v2, %v30_v1  ;;  %v33_v5 = vld [vmem:[%s1267_s0 + $0x18] sm:$0xff]  ;;  %871 = vset.pattern.permute.xlu0 %v957_v6  ;;  %872 = vset.pattern.permute.xlu1 %v957_v6  ;;  %v34_v9 = vld [vmem:[%s1267_s0 + $0x20] sm:$0xff]  ;;  %v35_v10 = vld [vmem:[%s1267_s0 + $0x28] sm:$0xff] }
   0x5   :  { %v47_v7 = vpack.c.bf16 %v33_v5, %v32_v3  ;;  %v873_v11 = vld [vmem:[%s1268_s1] sm:$0xff]   ;;  %v48_v14 = vpack.c.bf16 %v35_v10, %v34_v9  ;;  %v63_v15 = vld [vmem:[%s1269_s2 + $0x8] sm:$0xff]  ;;  %v64_v16 = vld [vmem:[%s1269_s2 + $0x10] sm:$0xff] }
   0x6   :  { %861 = vmatprep.subr.msk.bf16.mxu0 %vm130_vm0, %v46_v4  ;;  %v144_v8 = vsel %vm130_vm0, %v46_v4, 0  ;;  %v62_v12 = vld [vmem:[%s1269_s2] sm:$0xff]  ;;  %829 = vmatprep.mubr.msk.bf16.mxu0 %vm130_vm0, %v873_v11  ;;  %v65_v17 = vld [vmem:[%s1269_s2 + $0x18] sm:$0xff]  ;;  %v36_v19 = vld [vmem:[%s1267_s0 + $0x30] sm:$0xff] }
   0x7   :  { %814 = vmatpush3.bf16.xpose.msra.mxu0 %v144_v8  ;;  %72 = vperm.xlu0 %871, %v62_v12   ;;  %v147_v13 = vsel %vm130_vm0, %v47_v7, 0  ;;  %v66_v18 = vld [vmem:[%s1269_s2 + $0x20] sm:$0xff]  ;;  %v37_v20 = vld [vmem:[%s1267_s0 + $0x38] sm:$0xff]  ;;  %v67_v21 = vld [vmem:[%s1269_s2 + $0x28] sm:$0xff]  ;;  %v150_v22 = vsel %vm130_vm0, %v48_v14, 0 }
   0x8   :  { %862 = vmatprep.subr.msk.bf16.mxu0 %vm130_vm0, %v47_v7  ;;  %82 = vperm.xlu1 %872, %v64_v16   ;;  %v49_v23 = vpack.c.bf16 %v37_v20, %v36_v19  ;;  %v68_v24 = vld [vmem:[%s1269_s2 + $0x30] sm:$0xff]  ;;  %v69_v25 = vld [vmem:[%s1269_s2 + $0x38] sm:$0xff]  ;;  %v284_v26 = vld [vmem:[%s1271_s4] sm:$0xff] }
   0x9   :  { %v38_v28 = vld [vmem:[%s1267_s0 + $0x40] sm:$0xff]  ;;  %v39_v29 = vld [vmem:[%s1267_s0 + $0x48] sm:$0xff]  ;;  %v286_v31 = vld [vmem:[%s1271_s4 + $0x10] sm:$0xff] }
   0xa   :  { %v153_v27 = vsel %vm130_vm0, %v49_v23, 0  ;;  %v285_v30 = vld [vmem:[%s1271_s4 + $0x8] sm:$0xff]  ;;  %v50_v32 = vpack.c.bf16 %v39_v29, %v38_v28  ;;  %v287_v33 = vld [vmem:[%s1271_s4 + $0x18] sm:$0xff] }
   0xb   :  { %77 = vperm.xlu0 %871, %v63_v15  }
   0xc   :  { %87 = vperm.xlu1 %872, %v65_v17  }
   0xf   :  { %816 = vmatpush3.bf16.xpose.msra.mxu0 %v147_v13  ;;  %92 = vperm.xlu0 %871, %v66_v18  }
  0x10   :  { %863 = vmatprep.subr.msk.bf16.mxu0 %vm130_vm0, %v48_v14  ;;  %97 = vperm.xlu1 %872, %v67_v21  }
  0x13   :  { %102 = vperm.xlu0 %871, %v68_v24  }
  0x14   :  { %107 = vperm.xlu1 %872, %v69_v25  }
  0x17   :  { %818 = vmatpush3.bf16.xpose.msra.mxu0 %v150_v22  ;;  %302 = vperm.xlu0 %871, %v284_v26  }
  0x18   :  { %864 = vmatprep.subr.msk.bf16.mxu0 %vm130_vm0, %v49_v23  ;;  %307 = vperm.xlu1 %872, %v285_v30  }
  0x1b   :  { %312 = vperm.xlu0 %871, %v286_v31  }
  0x1f   :  { %820 = vmatpush3.bf16.xpose.msra.mxu0 %v153_v27 }
  0x20   :  { %14 = vsyncpa [#allocation4], 0  ;;  %865 = vmatprep.subr.msk.bf16.mxu0 %vm130_vm0, %v50_v32  ;;  %v288_v34 = vld [vmem:[%s1271_s4 + $0x20] sm:$0xff]  ;;  %v40_v35 = vld [vmem:[%s1267_s0 + $0x50] sm:$0xff]  ;;  %317 = vperm.xlu1 %872, %v287_v33   ;;  %v156_v38 = vsel %vm130_vm0, %v50_v32, 0  ;;  %vm420_vm1 = vcmask 523264  }
  0x21   :  { %v41_v36 = vld [vmem:[%s1267_s0 + $0x58] sm:$0xff]  ;;  %322 = vperm.xlu0 %871, %v288_v34   ;;  %v289_v37 = vld [vmem:[%s1271_s4 + $0x28] sm:$0xff]  ;;  %v290_v40 = vld [vmem:[%s1271_s4 + $0x30] sm:$0xff] }
  0x22   :  { %v51_v39 = vpack.c.bf16 %v41_v36, %v40_v35  ;;  %v291_v41 = vld [vmem:[%s1271_s4 + $0x38] sm:$0xff]  ;;  %v292_v42 = vld [vmem:[%s1271_s4 + $0x40] sm:$0xff]  ;;  %v43_v44 = vld [vmem:[%s1267_s0 + $0x68] sm:$0xff] }
  0x23   :  { %v42_v43 = vld [vmem:[%s1267_s0 + $0x60] sm:$0xff]  ;;  %v293_v45 = vld [vmem:[%s1271_s4 + $0x48] sm:$0xff]  ;;  %v294_v48 = vld [vmem:[%s1271_s4 + $0x50] sm:$0xff] }
  0x24   :  { %327 = vperm.xlu1 %872, %v289_v37   ;;  %v159_v46 = vsel %vm130_vm0, %v51_v39, 0  ;;  %v52_v47 = vpack.c.bf16 %v43_v44, %v42_v43  ;;  %v606_v49 = vld [vmem:[%s1272_s5] sm:$0xff]  ;;  %v607_v50 = vld [vmem:[%s1272_s5 + $0x8] sm:$0xff]  ;;  %v44_v51 = vld [vmem:[%s1267_s0 + $0x70] sm:$0xff] }
  0x25   :  { %332 = vperm.xlu0 %871, %v290_v40   ;;  %v45_v52 = vld [vmem:[%s1267_s0 + $0x78] sm:$0xff]  ;;  %v608_v56 = vld [vmem:[%s1272_s5 + $0x10] sm:$0xff]  ;;  %v296_v57 = vld [vmem:[%s1271_s4 + $0x60] sm:$0xff] }
  0x26   :  { %v295_v53 = vld [vmem:[%s1271_s4 + $0x58] sm:$0xff]  ;;  %v162_v54 = vsel %vm130_vm0, %v52_v47, 0  ;;  %v53_v55 = vpack.c.bf16 %v45_v52, %v44_v51  ;;  %v297_v59 = vld [vmem:[%s1271_s4 + $0x68] sm:$0xff]  ;;  %v610_v61 = vld [vmem:[%s1272_s5 + $0x20] sm:$0xff] }
  0x27   :  { %822 = vmatpush3.bf16.xpose.msra.mxu0 %v156_v38  ;;  %v609_v58 = vld [vmem:[%s1272_s5 + $0x18] sm:$0xff]  ;;  %v298_v62 = vld [vmem:[%s1271_s4 + $0x70] sm:$0xff]  ;;  %v611_v63 = vld [vmem:[%s1272_s5 + $0x28] sm:$0xff] }
  0x28   :  { %866 = vmatprep.subr.msk.bf16.mxu0 %vm130_vm0, %v51_v39  ;;  %337 = vperm.xlu1 %872, %v291_v41   ;;  %v165_v60 = vsel %vm130_vm0, %v53_v55, 0  ;;  %v874_v0 = vld [vmem:[%s1268_s1 + $0x8] sm:$0xff]   ;;  %v875_v1 = vld [vmem:[%s1268_s1 + $0x10] sm:$0xff]   ;;  %v299_v2 = vld [vmem:[%s1271_s4 + $0x78] sm:$0xff] }
  0x29   :  { %342 = vperm.xlu0 %871, %v292_v42   ;;  %v612_v3 = vld [vmem:[%s1272_s5 + $0x30] sm:$0xff]  ;;  %v613_v4 = vld [vmem:[%s1272_s5 + $0x38] sm:$0xff]  ;;  %v614_v5 = vld [vmem:[%s1272_s5 + $0x40] sm:$0xff] }
  0x2a   :  { %v876_v6 = vld [vmem:[%s1268_s1 + $0x18] sm:$0xff]   ;;  %v615_v7 = vld [vmem:[%s1272_s5 + $0x48] sm:$0xff]  ;;  %v616_v8 = vld [vmem:[%s1272_s5 + $0x50] sm:$0xff] }
  0x2b   :  { %v617_v9 = vld [vmem:[%s1272_s5 + $0x58] sm:$0xff]  ;;  %v618_v10 = vld [vmem:[%s1272_s5 + $0x60] sm:$0xff]  ;;  %v619_v11 = vld [vmem:[%s1272_s5 + $0x68] sm:$0xff] }
  0x2c   :  { %347 = vperm.xlu1 %872, %v293_v45   ;;  %v620_v12 = vld [vmem:[%s1272_s5 + $0x70] sm:$0xff]  ;;  %v621_v13 = vld [vmem:[%s1272_s5 + $0x78] sm:$0xff]  ;;  %v739_v14 = vld [vmem:[#allocation2] sm:$0x1] }
  0x2d   :  { %352 = vperm.xlu0 %871, %v294_v48   ;;  %v877_v15 = vld [vmem:[%s1270_s3] sm:$0xff]  }
  0x2e   :  { %845 = vmatprep.mubr.msk.bf16.mxu1 %vm420_vm1, %v877_v15  ;;  %v881_v15 = vld [vmem:[%s1270_s3 + $0x20] sm:$0xff]  }
  0x2f   :  { %824 = vmatpush3.bf16.xpose.msra.mxu0 %v159_v46 }
  0x30   :  { %867 = vmatprep.subr.msk.bf16.mxu0 %vm130_vm0, %v52_v47  ;;  %624 = vperm.xlu1 %872, %v606_v49  }
  0x31   :  { %629 = vperm.xlu0 %871, %v607_v50  }
  0x34   :  { %357 = vperm.xlu1 %872, %v295_v53  }
  0x35   :  { %634 = vperm.xlu0 %871, %v608_v56  }
  0x37   :  { %826 = vmatpush3.bf16.xpose.msra.mxu0 %v162_v54 }
  0x38   :  { %868 = vmatprep.subr.msk.bf16.mxu0 %vm130_vm0, %v53_v55  ;;  %362 = vperm.xlu1 %872, %v296_v57  }
  0x39   :  { %639 = vperm.xlu0 %871, %v609_v58  }
  0x3c   :  { %367 = vperm.xlu1 %872, %v297_v59  }
  0x3d   :  { %644 = vperm.xlu0 %871, %v610_v61  }
  0x3f   :  { %828 = vmatpush3.bf16.xpose.msra.mxu0 %v165_v60 }
  0x40   :  { %372 = vperm.xlu1 %872, %v298_v62  }
  0x41   :  { %649 = vperm.xlu0 %871, %v611_v63  }
  0x44   :  { %377 = vperm.xlu1 %872, %v299_v2  }
  0x45   :  { %654 = vperm.xlu0 %871, %v612_v3  }
  0x46   :  { %830 = vmatmul.mubr.msk.bf16.vlgmr.msra.gmra.mrb[0].mxu0 %vm130_vm0, %v874_v0 }
  0x47   :  { %833 = vmatprep.mubr.msk.bf16.mxu0 %vm130_vm0, %v875_v1 }
  0x48   :  { %659 = vperm.xlu1 %872, %v613_v4  }
  0x49   :  { %664 = vperm.xlu0 %871, %v614_v5  }
  0x4c   :  { %669 = vperm.xlu1 %872, %v615_v7  }
  0x4d   :  { %674 = vperm.xlu0 %871, %v616_v8  }
  0x4e   :  { %834 = vmatmul.mubr.msk.bf16.gmra.mrb[4].mxu0 %vm130_vm0, %v876_v6 }
  0x50   :  { %679 = vperm.xlu1 %872, %v617_v9  }
  0x51   :  { %684 = vperm.xlu0 %871, %v618_v10  }
  0x54   :  { %689 = vperm.xlu1 %872, %v619_v11  }
  0x55   :  { %694 = vperm.xlu0 %871, %v620_v12   ;;  %v878_v12 = vld [vmem:[%s1270_s3 + $0x8] sm:$0xff]  }
  0x58   :  { %699 = vperm.xlu1 %872, %v621_v13   ;;  %v879_v13 = vld [vmem:[%s1270_s3 + $0x10] sm:$0xff]  }
  0x59   :  { %742 = vperm.xlu0 %871, %v739_v14   ;;  %v880_v14 = vld [vmem:[%s1270_s3 + $0x18] sm:$0xff]  }
  0x86   :  { %v73_v16 = vpop.permute.xlu0 %72 }
  0x87   :  { %v83_v17 = vpop.permute.xlu1 %82 }
  0x8a   :  { %v78_v18 = vpop.permute.xlu0 %77 }
  0x8b   :  { %v88_v19 = vpop.permute.xlu1 %87 }
  0x8e   :  { %v93_v23 = vpop.permute.xlu0 %92 }
  0x8f   :  { %v98_v29 = vpop.permute.xlu1 %97 }
  0x92   :  { %v103_v34 = vpop.permute.xlu0 %102 }
  0x93   :  { %v108_v38 = vpop.permute.xlu1 %107 }
 0x119   :  { %v831_v20 = vpop.f32.mrb[0].mxu0 }
 0x11a   :  { %v210_v21 = vadd.f32 %v831_v20, %v83_v17  ;;  %v201_v22 = vpop.f32.mrb[1].mxu0  ;;  %v883_v17 = vld [vmem:[%s1270_s3 + $0x30] sm:$0xff]   ;;  %v308_v20 = vpop.permute.xlu1 %307 }
 0x11b   :  { %v202_v24 = vadd.f32 %v201_v22, %v73_v16  ;;  %v832_v25 = vpop.f32.mrb[2].mxu0  ;;  %v882_v16 = vld [vmem:[%s1270_s3 + $0x28] sm:$0xff]  }
 0x11c   :  { %v234_v26 = vmul.f32 0.5, %v210_v21  ;;  %v213_v27 = vadd.f32 %v832_v25, %v88_v19  ;;  %v204_v28 = vpop.f32.mrb[3].mxu0  ;;  %v303_v19 = vpop.permute.xlu0 %302 }
 0x11d   :  { %v232_v30 = vmul.f32 0.5, %v202_v24  ;;  %v205_v31 = vadd.f32 %v204_v28, %v78_v18  ;;  %v884_v18 = vld [vmem:[%s1270_s3 + $0x38] sm:$0xff]   ;;  %s958_s3 = smov [#allocation3]  }
 0x11e   :  { %885 = vtanh.f32 %v234_v26  ;;  %v235_v32 = vmul.f32 0.5, %v213_v27  ;;  %v318_v22 = vpop.permute.xlu1 %317  ;;  %s757_s9 = sshll.u32 %s958_s3, 4  ;;  %s758_s9 = int_to_ptr.vmem [resolvable:$true] %s757_s9 }
 0x11f   :  { %887 = vtanh.f32 %v232_v30  ;;  %v233_v33 = vmul.f32 0.5, %v205_v31  ;;  %s933_s10 = scalar_lea.vmem %s758_s9, 16  ;;  %s937_s0 = scalar_lea.vmem %s758_s9, 32 }
 0x120   :  { %889 = vtanh.f32 %v235_v32  ;;  %v313_v21 = vpop.permute.xlu0 %312  ;;  %p934_p0 = scmp.ne.s32.totalorder %s758_s9, %s933_s10  ;;  %p938_p1 = scmp.lt.s32.totalorder %s758_s9, %s758_s9 }
 0x121   :  { %891 = vtanh.f32 %v233_v33  ;;  %v835_v35 = vpop.f32.mrb[4].mxu0  ;;  %p939_p2 = scmp.lt.s32.totalorder %s937_s0, %s933_s10 }
 0x122   :  { %v226_v36 = vadd.f32 %v835_v35, %v103_v34  ;;  %v217_v37 = vpop.f32.mrb[5].mxu0  ;;  %v328_v24 = vpop.permute.xlu1 %327 }
 0x123   :  { %v218_v39 = vadd.f32 %v217_v37, %v93_v23  ;;  %v836_v40 = vpop.f32.mrb[6].mxu0  ;;  %p940_p3 = por %p939_p2, %p938_p1 }
 0x124   :  { %v238_v41 = vmul.f32 0.5, %v226_v36  ;;  %v229_v42 = vadd.f32 %v836_v40, %v108_v38  ;;  %v220_v43 = vpop.f32.mrb[7].mxu0  ;;  %v323_v23 = vpop.permute.xlu0 %322 }
 0x125   :  { %v236_v44 = vmul.f32 0.5, %v218_v39  ;;  %v221_v45 = vadd.f32 %v220_v43, %v98_v29  ;;  %p941_p4 = pnand %p940_p3, %p934_p0 }
 0x126   :  { %893 = vtanh.f32 %v238_v41  ;;  %v239_v46 = vmul.f32 0.5, %v229_v42  ;;  %v338_v26 = vpop.permute.xlu1 %337 }
 0x127   :  { %895 = vtanh.f32 %v236_v44  ;;  %v237_v47 = vmul.f32 0.5, %v221_v45 }
 0x128   :  { %v886_v48 = vpop.eup %885  ;;  %897 = vtanh.f32 %v239_v46  ;;  %v333_v25 = vpop.permute.xlu0 %332 }
 0x129   :  { %v888_v49 = vpop.eup %887  ;;  %v250_v50 = vmul.f32 0.5, %v886_v48  ;;  %899 = vtanh.f32 %v237_v47 }
 0x12a   :  { %v890_v51 = vpop.eup %889  ;;  %v248_v52 = vmul.f32 0.5, %v888_v49  ;;  %v348_v28 = vpop.permute.xlu1 %347 }
 0x12b   :  { %v892_v53 = vpop.eup %891  ;;  %v251_v54 = vmul.f32 0.5, %v890_v51  ;;  %v258_v56 = vadd.f32 0.5, %v250_v50 }
 0x12c   :  { %v249_v55 = vmul.f32 0.5, %v892_v53  ;;  %v256_v58 = vadd.f32 0.5, %v248_v52  ;;  %v343_v27 = vpop.permute.xlu0 %342 }
 0x12d   :  { %v259_v57 = vadd.f32 0.5, %v251_v54 }
 0x12e   :  { %v257_v59 = vadd.f32 0.5, %v249_v55  ;;  %v1234_v30 = vpop.permute.xlu1 %624 }
 0x12f   :  { %v281_v60 = vpack.c.bf16 %v259_v57, %v258_v56 }
 0x130   :  { %v894_v61 = vpop.eup %893  ;;  %v280_v62 = vpack.c.bf16 %v257_v59, %v256_v58  ;;  %v353_v29 = vpop.permute.xlu0 %352 }
 0x131   :  { %v896_v63 = vpop.eup %895  ;;  %v254_v0 = vmul.f32 0.5, %v894_v61 }
 0x132   :  { %v898_v1 = vpop.eup %897  ;;  %v252_v2 = vmul.f32 0.5, %v896_v63  ;;  %837 = vmatprep.subr.bf16.mxu1 %v280_v62  ;;  %v358_v32 = vpop.permute.xlu1 %357 }
 0x133   :  { %v900_v3 = vpop.eup %899  ;;  %v255_v4 = vmul.f32 0.5, %v898_v1  ;;  %838 = vmatpush3.bf16.msra.mxu1 %v280_v62  ;;  %v262_v6 = vadd.f32 0.5, %v254_v0 }
 0x134   :  { %v253_v5 = vmul.f32 0.5, %v900_v3  ;;  %839 = vmatprep.subr.bf16.mxu1 %v281_v60  ;;  %v260_v8 = vadd.f32 0.5, %v252_v2  ;;  %v1236_v31 = vpop.permute.xlu0 %629 }
 0x135   :  { %v263_v7 = vadd.f32 0.5, %v255_v4 }
 0x136   :  { %v261_v9 = vadd.f32 0.5, %v253_v5  ;;  %v1240_v42 = vpop.permute.xlu1 %362 }
 0x137   :  { %840 = vmatpush3.bf16.msra.mxu1 %v281_v60  ;;  %v283_v10 = vpack.c.bf16 %v263_v7, %v262_v6 }
 0x138   :  { %v282_v11 = vpack.c.bf16 %v261_v9, %v260_v8  ;;  %v1238_v36 = vpop.permute.xlu0 %634 }
 0x13a   :  { %841 = vmatprep.subr.bf16.mxu1 %v282_v11  ;;  %v1244_v51 = vpop.permute.xlu1 %367 }
 0x13b   :  { %842 = vmatpush3.bf16.msra.mxu1 %v282_v11 }
 0x13c   :  { %843 = vmatprep.subr.bf16.mxu1 %v283_v10  ;;  %v1242_v47 = vpop.permute.xlu0 %639 }
 0x13e   :  { %v373_v0 = vpop.permute.xlu1 %372 }
 0x13f   :  { %844 = vmatpush3.bf16.msra.mxu1 %v283_v10 }
 0x140   :  { %v1246_v60 = vpop.permute.xlu0 %644 }
 0x142   :  { %846 = vmatmul.mubr.msk.bf16.vlgmr.msra.gmra.mrb[0].mxu1 %vm420_vm1, %v878_v12 }
 0x143   :  { %849 = vmatprep.mubr.msk.bf16.mxu1 %vm420_vm1, %v879_v13 }
 0x14a   :  { %850 = vmatmul.mubr.msk.bf16.gmra.mrb[4].mxu1 %vm420_vm1, %v880_v14 }
 0x14b   :  { %853 = vmatprep.mubr.msk.bf16.mxu1 %vm420_vm1, %v881_v15 }
 0x152   :  { %854 = vmatmul.mubr.msk.bf16.gmra.mrb[8].mxu1 %vm420_vm1, %v882_v16  ;;  %v650_v16 = vpop.permute.xlu0 %649 }
 0x153   :  { %857 = vmatprep.mubr.msk.bf16.mxu1 %vm420_vm1, %v883_v17 }
 0x15a   :  { %858 = vmatmul.mubr.msk.bf16.gmra.mrb[12].mxu1 %vm420_vm1, %v884_v18 }
 0x215   :  { %v847_v33 = vpop.f32.mrb[0].mxu1 }
 0x216   :  { %v488_v34 = vadd.f32 %v847_v33, %v313_v21  ;;  %v479_v35 = vpop.f32.mrb[1].mxu1 }
 0x217   :  { %v480_v37 = vadd.f32 %v479_v35, %v303_v19  ;;  %v848_v38 = vpop.f32.mrb[2].mxu1 }
 0x218   :  { %v544_v39 = vmul.f32 0.5, %v488_v34  ;;  %v491_v40 = vadd.f32 %v848_v38, %v318_v22  ;;  %v482_v41 = vpop.f32.mrb[3].mxu1  ;;  %v378_v22 = vpop.permute.xlu1 %377 }
 0x219   :  { %v542_v43 = vmul.f32 0.5, %v480_v37  ;;  %v483_v44 = vadd.f32 %v482_v41, %v308_v20  ;;  %v655_v41 = vpop.permute.xlu0 %654 }
 0x21a   :  { %901 = vtanh.f32 %v544_v39  ;;  %v545_v45 = vmul.f32 0.5, %v491_v40 }
 0x21b   :  { %903 = vtanh.f32 %v542_v43  ;;  %v543_v46 = vmul.f32 0.5, %v483_v44 }
 0x21c   :  { %905 = vtanh.f32 %v545_v45 }
 0x21d   :  { %907 = vtanh.f32 %v543_v46  ;;  %v851_v48 = vpop.f32.mrb[4].mxu1 }
 0x21e   :  { %v504_v49 = vadd.f32 %v851_v48, %v333_v25  ;;  %v495_v50 = vpop.f32.mrb[5].mxu1 }
 0x21f   :  { %v496_v52 = vadd.f32 %v495_v50, %v323_v23  ;;  %v852_v53 = vpop.f32.mrb[6].mxu1 }
 0x220   :  { %v548_v54 = vmul.f32 0.5, %v504_v49  ;;  %v507_v55 = vadd.f32 %v852_v53, %v338_v26  ;;  %v498_v56 = vpop.f32.mrb[7].mxu1 }
 0x221   :  { %v546_v57 = vmul.f32 0.5, %v496_v52  ;;  %v499_v58 = vadd.f32 %v498_v56, %v328_v24  ;;  %v660_v52 = vpop.permute.xlu1 %659 }
 0x222   :  { %909 = vtanh.f32 %v548_v54  ;;  %v549_v59 = vmul.f32 0.5, %v507_v55 }
 0x223   :  { %911 = vtanh.f32 %v546_v57  ;;  %v547_v61 = vmul.f32 0.5, %v499_v58 }
 0x224   :  { %v902_v62 = vpop.eup %901  ;;  %913 = vtanh.f32 %v549_v59 }
 0x225   :  { %v904_v63 = vpop.eup %903  ;;  %915 = vtanh.f32 %v547_v61  ;;  %v855_v1 = vpop.f32.mrb[8].mxu1  ;;  %v576_v3 = vmul.f32 0.5, %v902_v62 }
 0x226   :  { %v906_v2 = vpop.eup %905  ;;  %v574_v4 = vmul.f32 0.5, %v904_v63  ;;  %v520_v5 = vadd.f32 %v855_v1, %v353_v29  ;;  %v511_v6 = vpop.f32.mrb[9].mxu1 }
 0x227   :  { %v908_v7 = vpop.eup %907  ;;  %v577_v8 = vmul.f32 0.5, %v906_v2  ;;  %v512_v9 = vadd.f32 %v511_v6, %v343_v27  ;;  %v856_v10 = vpop.f32.mrb[10].mxu1  ;;  %v592_v19 = vadd.f32 0.5, %v576_v3 }
 0x228   :  { %v590_v11 = vadd.f32 0.5, %v574_v4  ;;  %v575_v12 = vmul.f32 0.5, %v908_v7  ;;  %v552_v13 = vmul.f32 0.5, %v520_v5  ;;  %v523_v14 = vadd.f32 %v856_v10, %v358_v32  ;;  %v514_v15 = vpop.f32.mrb[11].mxu1  ;;  %v670_v7 = vpop.permute.xlu1 %669 }
 0x229   :  { %v550_v17 = vmul.f32 0.5, %v512_v9  ;;  %v515_v18 = vadd.f32 %v514_v15, %v348_v28  ;;  %v593_v23 = vadd.f32 0.5, %v577_v8  ;;  %v704_v28 = vmul.f32 %v1238_v36, %v592_v19 }
 0x22a   :  { %v591_v20 = vadd.f32 0.5, %v575_v12  ;;  %917 = vtanh.f32 %v552_v13  ;;  %v553_v21 = vmul.f32 0.5, %v523_v14  ;;  %v702_v26 = vmul.f32 %v1234_v30, %v590_v11 }
 0x22b   :  { %919 = vtanh.f32 %v550_v17  ;;  %v551_v24 = vmul.f32 0.5, %v515_v18  ;;  %v705_v43 = vmul.f32 %v1242_v47, %v593_v23 }
 0x22c   :  { %v910_v25 = vpop.eup %909  ;;  %v703_v27 = vmul.f32 %v1236_v31, %v591_v20  ;;  %921 = vtanh.f32 %v553_v21 }
 0x22d   :  { %v912_v29 = vpop.eup %911  ;;  %v580_v32 = vmul.f32 0.5, %v910_v25  ;;  %923 = vtanh.f32 %v551_v24  ;;  %v859_v33 = vpop.f32.mrb[12].mxu1 }
 0x22e   :  { %v914_v34 = vpop.eup %913  ;;  %v718_v35 = vadd.f32 %v703_v27, %v702_v26  ;;  %v578_v37 = vmul.f32 0.5, %v912_v29  ;;  %v536_v38 = vadd.f32 %v859_v33, %v373_v0  ;;  %v527_v39 = vpop.f32.mrb[13].mxu1 }
 0x22f   :  { %v916_v40 = vpop.eup %915  ;;  %v581_v44 = vmul.f32 0.5, %v914_v34  ;;  %v528_v30 = vadd.f32 %v527_v39, %v1240_v42  ;;  %v860_v31 = vpop.f32.mrb[14].mxu1  ;;  %v596_v53 = vadd.f32 0.5, %v580_v32 }
 0x230   :  { %v719_v45 = vadd.f32 %v718_v35, %v704_v28  ;;  %v594_v46 = vadd.f32 0.5, %v578_v37  ;;  %v579_v48 = vmul.f32 0.5, %v916_v40  ;;  %v556_v49 = vmul.f32 0.5, %v536_v38  ;;  %v530_v50 = vpop.f32.mrb[15].mxu1  ;;  %v665_v0 = vpop.permute.xlu0 %664 }
 0x231   :  { %v554_v36 = vmul.f32 0.5, %v528_v30  ;;  %v539_v54 = vadd.f32 %v860_v31, %v378_v22  ;;  %v597_v58 = vadd.f32 0.5, %v581_v44  ;;  %v531_v42 = vadd.f32 %v530_v50, %v1244_v51  ;;  %v680_v22 = vpop.permute.xlu1 %679 }
 0x232   :  { %v706_v55 = vmul.f32 %v1246_v60, %v594_v46  ;;  %v720_v56 = vadd.f32 %v719_v45, %v705_v43  ;;  %v595_v57 = vadd.f32 0.5, %v579_v48  ;;  %925 = vtanh.f32 %v556_v49 }
 0x233   :  { %927 = vtanh.f32 %v554_v36  ;;  %v557_v47 = vmul.f32 0.5, %v539_v54  ;;  %v555_v1 = vmul.f32 0.5, %v531_v42  ;;  %v708_v3 = vmul.f32 %v655_v41, %v596_v53 }
 0x234   :  { %v918_v59 = vpop.eup %917  ;;  %v721_v61 = vadd.f32 %v720_v56, %v706_v55  ;;  %v707_v62 = vmul.f32 %v650_v16, %v595_v57  ;;  %v709_v8 = vmul.f32 %v660_v52, %v597_v58  ;;  %v675_v16 = vpop.permute.xlu0 %674  ;;  %v745_v53 = vlaneseq }
 0x235   :  { %v920_v63 = vpop.eup %919  ;;  %929 = vtanh.f32 %v557_v47  ;;  %v584_v5 = vmul.f32 0.5, %v918_v59  ;;  %v690_v40 = vpop.permute.xlu1 %689 }
 0x236   :  { %v922_v2 = vpop.eup %921  ;;  %v722_v4 = vadd.f32 %v721_v61, %v707_v62  ;;  %v582_v60 = vmul.f32 0.5, %v920_v63  ;;  %931 = vtanh.f32 %v555_v1  ;;  %v746_v55 = vshrl.u32 %v745_v53, 7 }
 0x237   :  { %v924_v6 = vpop.eup %923  ;;  %v585_v11 = vmul.f32 0.5, %v922_v2  ;;  %v600_v12 = vadd.f32 0.5, %v584_v5 }
 0x238   :  { %v723_v9 = vadd.f32 %v722_v4, %v708_v3  ;;  %v598_v10 = vadd.f32 0.5, %v582_v60  ;;  %v583_v51 = vmul.f32 0.5, %v924_v6  ;;  %v685_v28 = vpop.permute.xlu0 %684  ;;  %v747_v58 = vsub.s32 0, %v746_v55 }
 0x239   :  { %v601_v19 = vadd.f32 0.5, %v585_v11  ;;  %v712_v23 = vmul.f32 %v675_v16, %v600_v12  ;;  %v700_v49 = vpop.permute.xlu1 %699 }
 0x23a   :  { %v710_v13 = vmul.f32 %v665_v0, %v598_v10  ;;  %v724_v14 = vadd.f32 %v723_v9, %v709_v8  ;;  %v599_v15 = vadd.f32 0.5, %v583_v51 }
 0x23b   :  { %v713_v27 = vmul.f32 %v680_v22, %v601_v19 }
 0x23c   :  { %v926_v17 = vpop.eup %925  ;;  %v725_v18 = vadd.f32 %v724_v14, %v710_v13  ;;  %v711_v20 = vmul.f32 %v670_v7, %v599_v15  ;;  %v695_v45 = vpop.permute.xlu0 %694 }
 0x23d   :  { %v928_v21 = vpop.eup %927  ;;  %v588_v32 = vmul.f32 0.5, %v926_v17 }
 0x23e   :  { %v726_v24 = vadd.f32 %v725_v18, %v711_v20  ;;  %v586_v25 = vmul.f32 0.5, %v928_v21 }
 0x23f   :  { %v930_v26 = vpop.eup %929  ;;  %v604_v41 = vadd.f32 0.5, %v588_v32 }
 0x240   :  { %v727_v29 = vadd.f32 %v726_v24, %v712_v23  ;;  %v602_v33 = vadd.f32 0.5, %v586_v25  ;;  %v932_v34 = vpop.eup %931  ;;  %v589_v38 = vmul.f32 0.5, %v930_v26  ;;  %v743_v42 = vpop.permute.xlu0 %742 }
 0x241   :  { %v587_v39 = vmul.f32 0.5, %v932_v34  ;;  %v716_v46 = vmul.f32 %v695_v45, %v604_v41  ;;  %v748_v61 = vrot.slane %v743_v42, %v747_v58 }
 0x242   :  { %v714_v35 = vmul.f32 %v685_v28, %v602_v33  ;;  %v728_v37 = vadd.f32 %v727_v29, %v713_v27  ;;  %v605_v30 = vadd.f32 0.5, %v589_v38 }
 0x243   :  { %v603_v44 = vadd.f32 0.5, %v587_v39 }
 0x244   :  { %v729_v43 = vadd.f32 %v728_v37, %v714_v35  ;;  %v717_v50 = vmul.f32 %v700_v49, %v605_v30 }
 0x245   :  { %v715_v31 = vmul.f32 %v690_v40, %v603_v44 }
 0x247   :  { %v730_v48 = vadd.f32 %v729_v43, %v715_v31 }
 0x249   :  { %v731_v52 = vadd.f32 %v730_v48, %v716_v46 }
 0x24b   :  { %v732_v36 = vadd.f32 %v731_v52, %v717_v50 }
 0x24d   :  { %v733_v54 = vrot.slane %v732_v36, 4 }
 0x24f   :  { %v734_v56 = vadd.f32 %v733_v54, %v732_v36 }
 0x251   :  { %v735_v57 = vrot.slane %v734_v56, 2 }
 0x253   :  { %v736_v47 = vadd.f32 %v735_v57, %v734_v56 }
 0x255   :  { %v737_v59 = vrot.slane %v736_v47, 1 }
 0x257   :  { %v738_v62 = vadd.f32 %v737_v59, %v736_v47 }
 0x259   :  { %v749_v63 = vadd.f32 %v748_v61, %v738_v62 }
 0x25b   :  { %750 = vst [vmem:[#allocation3] sm:$0x1] %v749_v63 }
 0x25c   :  { %944 = shalt.err (!%p941_p4)
}
 0x25d   :  { %s945_s12 = scalar_lea.hbm %s1274_s7, 16 }
 0x25e   :  { %p946_p5 = scmp.ne.s32.totalorder %s1274_s7, %s945_s12  ;;  %p949_p6 = scmp.lt.u32.totalorder %s945_s12, %s1274_s7 }
 0x260   :  { %p951_p7 = pnand %p949_p6, %p946_p5 }
 0x262   :  { %954 = shalt.err (!%p951_p7)
}
 0x263   :  { %760 = dma.vmem_to_hbm [thread:$0]  %s758_s9, 16, %s1274_s7, [#allocation4]  }
 0x264   :  { %955 = dma.done.wait [#allocation4], 16  }
 0x265   :  { %956 = vsyncadd [#allocation4], 4294967280 }
 0x266   :  { %764 = vsyncpa [#allocation4], 1 }

</bundles_post_ra>
